<compile_context>
chip_gen: v6e
topology: v6e:2x2x1
jax: 0.10.0
libtpu: 0.0.40
codegen_flags: <defaults>
</compile_context>

<pallas_src>
import jax
import jax.numpy as jnp
from jax.experimental import pallas as pl
from jax.experimental.pallas import tpu as pltpu


def _tpu_generation_params():
    """(input_block_bytes, vmem_limit_bytes, force_two_blocks) per chip gen."""
    block_bytes = 3 * 1024 * 1024      # ~85% of HBM roofline on v5e/v6e
    vmem_limit = 32 * 1024 * 1024
    force_two_blocks = False
    try:
        info = pltpu.get_tpu_info()
        name = " ".join(
            str(getattr(info, attr, ""))
            for attr in ("chip_version", "chip_name", "name")).lower()
        if "7" in name:
            # v7x: 3.2 TB/s HBM, 64 MiB VMEM/TC, 2 TCs -> bigger slabs (amortize
            # the ~0.35us per-step overhead) and a >=2-block grid for megacore.
            block_bytes = 6 * 1024 * 1024
            vmem_limit = 40 * 1024 * 1024
            force_two_blocks = True
    except Exception:
        pass
    return block_bytes, vmem_limit, force_two_blocks


def _choose_cols(n_vec):
    """Pick C = 3*c with c | n_vec (n_vec = #points).

    Prefer c a multiple of 128 (every row a whole number of lanes -> unmasked
    stores); otherwise the largest divisor <= 1024.  Either way (rows, C) is a
    free reshape of the flattened pointmap: no padding, no slicing, ever.
    """
    best = 1
    for c in range(min(n_vec, 1024), 0, -1):
        if n_vec % c == 0:
            if c % 128 == 0:
                return 3 * c
            if best == 1:
                best = c
    return 3 * best


def _affine_kernel(scale_ref, bias_ref, x_ref, o_ref):
    # Single FMA per element, computed in f32 in-register; output is written in
    # the input's native dtype (o_ref.dtype).  scale/bias are (1, C) rows that
    # broadcast along the sublane axis.
    x = x_ref[...].astype(jnp.float32)
    o_ref[...] = (x * scale_ref[...] + bias_ref[...]).astype(o_ref.dtype)


def pointmap_normalize(pts, ptsmap_min=None, ptsmap_max=None, k=0.8,
                       current_data=None):
    """Pallas implementation of PointmapNormalizer.forward.

    pts: (..., 3) array (f32 / bf16 / f16); output has the same shape & dtype.
    """
    assert 0.0 < k <= 1.0, "k should be between (0, 1]"
    assert pts.shape[-1] == 3
    if pts.size == 0:
        return pts

    orig_shape = pts.shape
    dtype = pts.dtype
    itemsize = jnp.dtype(dtype).itemsize
    total = pts.size
    n_vec = total // 3

    # Per-channel min/max (matches the reference's two branches).
    if current_data is None:
        mn = jnp.asarray(ptsmap_min, dtype=jnp.float32).reshape(3)
        mx = jnp.asarray(ptsmap_max, dtype=jnp.float32).reshape(3)
    else:
        # Reference computes the stats from pts itself when current_data is
        # given; tiny XLA reduction (single read pass, same as torch).
        flat3 = pts.reshape(-1, 3).astype(jnp.float32)
        mn = flat3.min(axis=0)
        mx = flat3.max(axis=0)

    # Fold (min, max, k) into one per-channel affine: out = pts*scale + bias.
    scale3 = (2.0 * k) / (mx - mn)
    bias3 = -k - mn * scale3

    # Zero-copy lane-dense 2-D view of the pointmap.
    C = _choose_cols(n_vec)
    rows = total // C
    assert rows * C == total
    x2d = pts.reshape(rows, C)                 # free bitcast (contiguous)

    reps = C // 3
    scale_row = jnp.tile(scale3, reps).reshape(1, C)
    bias_row = jnp.tile(bias3, reps).reshape(1, C)

    # Generation-aware block size (rows per slab).
    block_bytes, vmem_limit, force_two = _tpu_generation_params()
    sub = 8 * max(1, 4 // itemsize)            # min sublane tile: 8 f32, 16 bf16
    target_rows = max(sub, (block_bytes // (C * itemsize)) // sub * sub)
    if rows > target_rows:
        block_rows = target_rows               # multiple of sub; last block masked
    elif force_two and rows >= 2 * sub:
        # Guarantee >=2 grid blocks on v7x so both TensorCores get work.
        half = -(-rows // 2)
        block_rows = min(rows, -(-half // sub) * sub)
    else:
        block_rows = rows                      # full dim -> always legal

    grid = (pl.cdiv(rows, block_rows),)        # ragged last block is OOB-masked

    cost = pl.CostEstimate(
        flops=2 * total,
        transcendentals=0,
        bytes_accessed=2 * total * itemsize + 2 * C * 4,
    )

    out2d = pl.pallas_call(
        _affine_kernel,
        out_shape=jax.ShapeDtypeStruct((rows, C), dtype),
        grid_spec=pltpu.PrefetchScalarGridSpec(
            num_scalar_prefetch=0,
            grid=grid,
            in_specs=[
                pl.BlockSpec((1, C), lambda i: (0, 0)),           # scale row
                pl.BlockSpec((1, C), lambda i: (0, 0)),           # bias row
                pl.BlockSpec((block_rows, C), lambda i: (i, 0)),  # pts slab
            ],
            out_specs=pl.BlockSpec((block_rows, C), lambda i: (i, 0)),
        ),
        compiler_params=pltpu.CompilerParams(
            # "parallel" lets v7x shard the row axis across its 2 TCs; on
            # v5e/v6e parallel vs arbitrary is measured-neutral.
            dimension_semantics=("parallel",),
            vmem_limit_bytes=vmem_limit,
        ),
        cost_estimate=cost,
        # NOTE: default double-buffering kept; sweep pl.Buffered(3) on the
        # pts/out specs only if an xprof trace shows exposed DMA gaps.
    )(scale_row, bias_row, x2d)

    return out2d.reshape(orig_shape)


if __name__ == "__main__":
    key = jax.random.PRNGKey(0)
    k1, k2, k3 = jax.random.split(key, 3)

    ptsmap_min = jnp.array([-6.0, -4.0, -8.0], dtype=jnp.float32)
    ptsmap_max = jnp.array([6.0, 5.0, 7.0], dtype=jnp.float32)
    kval = 0.8

    def torch_ref(p, mn, mx, kk):
        p32 = p.astype(jnp.float32)
        lin = (p32 - mn) / (mx - mn)
        return (lin * (2.0 * kk) - kk).astype(p.dtype)

    # 1) f32 pointmap, lane-dense (divisible) path.
    B, H, W = 2, 16, 16
    pts = jax.random.uniform(k1, (B, H, W, 3), dtype=jnp.float32,
                             minval=-5.0, maxval=5.0)
    out = jax.block_until_ready(
        pointmap_normalize(pts, ptsmap_min, ptsmap_max, k=kval))
    ref = torch_ref(pts, ptsmap_min, ptsmap_max, kval)
    assert out.shape == pts.shape and out.dtype == pts.dtype
    assert jnp.allclose(out, ref, atol=1e-5, rtol=1e-5)

    # 2) Ragged spatial shape (total not divisible by 384): zero-copy fallback
    #    (no pad / slice passes), full-last-dim blocks.
    pts2 = jax.random.uniform(k2, (2, 7, 5, 3), dtype=jnp.float32,
                              minval=-5.0, maxval=5.0)
    out2 = jax.block_until_ready(
        pointmap_normalize(pts2, ptsmap_min, ptsmap_max, k=kval))
    ref2 = torch_ref(pts2, ptsmap_min, ptsmap_max, kval)
    assert out2.shape == pts2.shape
    assert jnp.allclose(out2, ref2, atol=1e-5, rtol=1e-5)

    # 3) bf16 pointmap: native dtype end-to-end (bf16 in, bf16 out).
    pts3 = jax.random.uniform(k3, (B, H, W, 3), dtype=jnp.float32,
                              minval=-5.0, maxval=5.0).astype(jnp.bfloat16)
    out3 = jax.block_until_ready(
        pointmap_normalize(pts3, ptsmap_min, ptsmap_max, k=kval))
    assert out3.dtype == jnp.bfloat16 and out3.shape == pts3.shape
    ref3 = torch_ref(pts3, ptsmap_min, ptsmap_max, kval)
    assert jnp.allclose(out3.astype(jnp.float32), ref3.astype(jnp.float32),
                        atol=2e-2, rtol=2e-2)

    # 4) current_data path: per-channel min/max taken from the pointmap itself.
    out4 = jax.block_until_ready(
        pointmap_normalize(pts, k=kval, current_data=pts))
    pmn = pts.reshape(-1, 3).min(axis=0)
    pmx = pts.reshape(-1, 3).max(axis=0)
    ref4 = torch_ref(pts, pmn, pmx, kval)
    assert jnp.allclose(out4, ref4, atol=1e-5, rtol=1e-5)

    # TODO(synk): exp_func / logarithmic scaling outside (a, b) is defined in
    # the module but never used by forward(); intentionally not implemented.
    print("KERNEL_OK")
</pallas_src>

<mosaic_0001>
module attributes {stable_mosaic.version = 11 : i64} {
  func.func @_affine_kernel(%arg0: i32, %arg1: memref<1x1536xf32, #tpu.memory_space<vmem>>, %arg2: memref<1x1536xf32, #tpu.memory_space<vmem>>, %arg3: memref<1x1536xf32, #tpu.memory_space<vmem>>, %arg4: memref<1x1536xf32, #tpu.memory_space<vmem>>) attributes {dimension_semantics = [#tpu.dimension_semantics<parallel>], iteration_bounds = array<i64: 1>, scalar_prefetch = 0 : i64, scratch_operands = 0 : i64, tpu.core_type = #tpu.core_type<tc>, window_params = [{pipeline_mode = #tpu.pipeline_mode<synchronous>, transform_indices = @transform_0, window_bounds = array<i64: 1, 1536>}, {pipeline_mode = #tpu.pipeline_mode<synchronous>, transform_indices = @transform_1, window_bounds = array<i64: 1, 1536>}, {transform_indices = @transform_2, window_bounds = array<i64: 1, 1536>}, {transform_indices = @transform_3, window_bounds = array<i64: 1, 1536>}]} {
    %c0 = arith.constant 0 : index
    %c0_0 = arith.constant 0 : index
    %0 = vector.load %arg3[%c0, %c0_0] : memref<1x1536xf32, #tpu.memory_space<vmem>>, vector<1x1536xf32>
    %c0_1 = arith.constant 0 : index
    %c0_2 = arith.constant 0 : index
    %1 = vector.load %arg1[%c0_1, %c0_2] : memref<1x1536xf32, #tpu.memory_space<vmem>>, vector<1x1536xf32>
    %2 = arith.mulf %0, %1 : vector<1x1536xf32>
    %c0_3 = arith.constant 0 : index
    %c0_4 = arith.constant 0 : index
    %3 = vector.load %arg2[%c0_3, %c0_4] : memref<1x1536xf32, #tpu.memory_space<vmem>>, vector<1x1536xf32>
    %4 = arith.addf %2, %3 : vector<1x1536xf32>
    %c0_5 = arith.constant 0 : index
    %c0_6 = arith.constant 0 : index
    %5 = vector.load %arg4[%c0_5, %c0_6] : memref<1x1536xf32, #tpu.memory_space<vmem>>, vector<1x1536xf32>
    tpu.vector_store %arg4[%c0_5, %c0_6], %4 {strides = array<i32>} : memref<1x1536xf32, #tpu.memory_space<vmem>>, vector<1x1536xf32>,
    return
  }
  func.func @transform_0(%arg0: i32) -> (i32, i32) {
    %c0_i32 = arith.constant 0 : i32
    %c0_i32_0 = arith.constant 0 : i32
    %c0_i32_1 = arith.constant 0 : i32
    return %c0_i32, %c0_i32_0 : i32, i32
  }
  func.func @transform_1(%arg0: i32) -> (i32, i32) {
    %c0_i32 = arith.constant 0 : i32
    %c0_i32_0 = arith.constant 0 : i32
    %c0_i32_1 = arith.constant 0 : i32
    return %c0_i32, %c0_i32_0 : i32, i32
  }
  func.func @transform_2(%arg0: i32) -> (i32, i32) {
    %c0_i32 = arith.constant 0 : i32
    %c0_i32_0 = arith.constant 0 : i32
    return %arg0, %c0_i32 : i32, i32
  }
  func.func @transform_3(%arg0: i32) -> (i32, i32) {
    %c0_i32 = arith.constant 0 : i32
    %c0_i32_0 = arith.constant 0 : i32
    return %arg0, %c0_i32 : i32, i32
  }
}

</mosaic_0001>

<bundles_post_ra>
// kernel: tpu_custom_call.1
= control target key start
LH: loop header
LB: loop body
LE: loop exit
PB: predicated region body
PF: predicated region fallthrough
CT: control target
= control target key end

     0   :  { %8 = vsyncpa [#allocation3], 0  ;;  %s208_s0 = inlined_call_operand.hbm [shape: f32[1,1536], index: 0, kind: input, shape index: {}]   ;;  %s209_s1 = inlined_call_operand.hbm [shape: f32[1,1536], index: 1, kind: input, shape index: {}]   ;;  %s210_s2 = inlined_call_operand.hbm [shape: f32[1,1536], index: 2, kind: input, shape index: {}]   ;;  %s211_s3 = inlined_call_operand.hbm [shape: f32[1,1536], index: 3, kind: output, shape index: {}]  }
   0x1   :  { %9 = vsyncpa [#allocation6], 0 }
   0x2   :  { %10 = vsyncpa [#allocation4], 0  ;;  %s172_s12 = smov [#allocation5]   ;;  %s173_s14 = smov [#allocation2]  }
   0x3   :  { %s27_s13 = sshll.u32 %s172_s12, 4  ;;  %s17_s15 = sshll.u32 %s173_s14, 4  ;;  %s28_s13 = int_to_ptr.vmem [resolvable:$true] %s27_s13  ;;  %s18_s15 = int_to_ptr.vmem [resolvable:$true] %s17_s15 }
   0x4   :  { %s94_s16 = scalar_lea.vmem %s28_s13, 192  ;;  %p99_p1 = scmp.lt.s32.totalorder %s28_s13, %s28_s13 }
   0x5   :  { %p95_p0 = scmp.ne.s32.totalorder %s28_s13, %s94_s16  ;;  %p100_p2 = scmp.lt.s32.totalorder %s94_s16, %s94_s16 }
   0x7   :  { %p101_p3 = por %p100_p2, %p99_p1 }
   0x9   :  { %p102_p4 = pnand %p101_p3, %p95_p0 }
   0xb   :  { %105 = shalt.err (!%p102_p4)
}
   0xc   :  { %30 = dma.hbm_to_vmem [thread:$0]  %s209_s1, 192, %s28_s13, [#allocation6]  }
   0xd   :  { %s114_s19 = scalar_lea.vmem %s18_s15, 192  ;;  %p119_p6 = scmp.lt.s32.totalorder %s18_s15, %s18_s15 }
   0xe   :  { %p115_p5 = scmp.ne.s32.totalorder %s18_s15, %s114_s19  ;;  %p120_p7 = scmp.lt.s32.totalorder %s114_s19, %s114_s19 }
  0x10   :  { %p121_p8 = por %p120_p7, %p119_p6 }
  0x12   :  { %p122_p9 = pnand %p121_p8, %p115_p5 }
  0x14   :  { %125 = shalt.err (!%p122_p9)
}
  0x15   :  { %20 = dma.hbm_to_vmem [thread:$0]  %s208_s0, 192, %s18_s15, [#allocation3]  }
  0x16   :  { %s174_s22 = smov [#allocation7]  }
  0x17   :  { %s37_s23 = sshll.u32 %s174_s22, 4  ;;  %s38_s23 = int_to_ptr.vmem [resolvable:$true] %s37_s23 }
  0x18   :  { %s134_s24 = scalar_lea.vmem %s38_s23, 192  ;;  %p139_p11 = scmp.lt.s32.totalorder %s38_s23, %s38_s23 }
  0x19   :  { %p135_p10 = scmp.ne.s32.totalorder %s38_s23, %s134_s24  ;;  %p140_p12 = scmp.lt.s32.totalorder %s134_s24, %s134_s24 }
  0x1b   :  { %p141_p13 = por %p140_p12, %p139_p11 }
  0x1d   :  { %p142_p0 = pnand %p141_p13, %p135_p10 }
  0x1f   :  { %145 = shalt.err (!%p142_p0)
}
  0x20   :  { %40 = dma.hbm_to_vmem [thread:$0]  %s210_s2, 192, %s38_s23, [#allocation6]  }
  0x21   :  { %166 = dma.done.wait [#allocation3], 192  }
  0x22   :  { %167 = vsyncadd [#allocation3], 4294967104 }
  0x23   :  { %168 = dma.done.wait [#allocation6], 384  }
  0x24   :  { %169 = vsyncadd [#allocation6], 4294966912  ;;  %v61_v0 = vlaneseq  ;;  %v50_v1 = vld [vmem:[#allocation7] sm:$0xff]  ;;  %v52_v2 = vld [vmem:[#allocation2] sm:$0xff]  ;;  %s175_s0 = smov [#allocation8]  }
  0x25   :  { %v56_v3 = vld [vmem:[#allocation5] sm:$0xff]  ;;  %s72_s26 = sshll.u32 %s175_s0, 4  ;;  %v54_v4 = vmul.f32 %v52_v2, %v50_v1  ;;  %v51_v5 = vld [vmem:[#allocation7 + $0x8] sm:$0xf]  ;;  %v53_v6 = vld [vmem:[#allocation2 + $0x8] sm:$0xf]  ;;  %s73_s26 = int_to_ptr.vmem [resolvable:$true] %s72_s26 }
  0x26   :  { %v57_v7 = vld [vmem:[#allocation5 + $0x8] sm:$0xf]  ;;  %v55_v8 = vmul.f32 %v53_v6, %v51_v5  ;;  %vm63_vm0 = vcmp.lt.s32.totalorder %v61_v0, 512  ;;  %s146_s2 = scalar_lea.vmem %s73_s26, 192  ;;  %p151_p2 = scmp.lt.s32.totalorder %s73_s26, %s73_s26 }
  0x27   :  { %v58_v9 = vadd.f32 %v56_v3, %v54_v4  ;;  %p147_p1 = scmp.ne.s32.totalorder %s73_s26, %s146_s2  ;;  %p152_p3 = scmp.lt.s32.totalorder %s146_s2, %s146_s2 }
  0x28   :  { %v59_v10 = vadd.f32 %v57_v7, %v55_v8 }
  0x29   :  { %60 = vst [vmem:[#allocation8] sm:$0xff] %v58_v9  ;;  %p153_p4 = por %p152_p3, %p151_p2 }
  0x2a   :  { %65 = vst.msk [vmem:[#allocation8 + $0x8] sm:$0xf] %vm63_vm0, %v59_v10 }
  0x2b   :  { %p154_p5 = pnand %p153_p4, %p147_p1 }
  0x2d   :  { %157 = shalt.err (!%p154_p5)
}
  0x2e   :  { %75 = dma.vmem_to_hbm [thread:$0]  %s73_s26, 192, %s211_s3, [#allocation4]  }
  0x2f   :  { %170 = dma.done.wait [#allocation4], 192  }
  0x30   :  { %171 = vsyncadd [#allocation4], 4294967104 }
  0x31   :  { %79 = vsyncpa [#allocation3], 1 }
  0x32   :  { %80 = vsyncpa [#allocation6], 1 }
  0x33   :  { %81 = vsyncpa [#allocation4], 1 }

</bundles_post_ra>
